<compile_context>
chip_gen: v7x
topology: tpu7x:2x2x1
jax: 0.10.0
libtpu: 0.0.40
codegen_flags: <defaults>
</compile_context>

<pallas_src>
import jax
import jax.numpy as jnp
from jax.experimental import pallas as pl
from jax.experimental.pallas import tpu as pltpu


_TILE_BYTES = 4 * 1024 * 1024          # target bytes per tile (pipeline holds ~4x)
_MAX_TB = 8192                         # row-tile cap (keeps single DMAs reasonable)
_VMEM_LIMIT_FLOOR = 24 * 1024 * 1024   # explicit scoped-VMEM request
_VMEM_LIMIT_CAP = 48 * 1024 * 1024     # stay well inside v7x's 64 MiB physical VMEM


def _temp_scale_kernel(inv_t_ref, x_ref, o_ref):
    # inv_t_ref: (1, 1) f32 in SMEM holding precomputed 1/temperature.
    inv_t = inv_t_ref[0, 0]
    x = x_ref[...].astype(jnp.float32)           # f32 compute: v5e-safe, no-op for f32
    o_ref[...] = (x * inv_t).astype(o_ref.dtype)


def _choose_tiles(rows, width, itemsize, sublane):
    """Pick (tb, tc) filling ~_TILE_BYTES, legal under the (8,128) block rule."""
    # --- lane (trailing-dim) tile ---
    if width % 128 != 0:
        # Full-extent trailing dim: legal ("or equal the full array dims") and avoids
        # any pad/slice HBM round-trip; only cost is a masked vst on the last lane group.
        tc = width
    elif width * sublane * itemsize <= _TILE_BYTES:
        tc = width
    else:
        tc = max(128, (_TILE_BYTES // (sublane * itemsize)) // 128 * 128)
        tc = min(tc, width)

    # --- row tile: fill the byte budget, sublane-aligned (or the full row extent) ---
    tb = _TILE_BYTES // max(1, tc * itemsize)
    tb = min(tb, rows, _MAX_TB)
    tb = (tb // sublane) * sublane if tb >= sublane else min(sublane, rows)

    # v7x has 2 TensorCores sharded over "parallel" grid axes: make sure a
    # single-tile launch still produces >= 2 grid steps so neither core idles.
    if pl.cdiv(rows, tb) * pl.cdiv(width, tc) < 2:
        if rows >= 2 * sublane:
            tb = pl.cdiv(pl.cdiv(rows, 2), sublane) * sublane
        elif width % 128 == 0 and width >= 256:
            tc = pl.cdiv(pl.cdiv(width, 2), 128) * 128
    return tb, tc


def temperature_scaling(logits: jax.Array, temperature: jax.Array) -> jax.Array:
    """logits: any-shape float array. temperature: shape (1,) parameter."""
    orig_shape = logits.shape
    orig_dtype = logits.dtype
    itemsize = jnp.dtype(orig_dtype).itemsize
    sublane = max(8, 32 // itemsize)   # 8 for f32, 16 for bf16, 32 for 8-bit types

    # Present a 2-D (rows, last_dim) view — free metadata reshape on contiguous
    # arrays; no padding and no post-kernel slice, so exactly one HBM pass.
    if logits.ndim >= 2:
        x2d = logits.reshape(-1, orig_shape[-1])
    else:
        x2d = logits.reshape(1, -1)

    rows, width = x2d.shape
    tb, tc = _choose_tiles(rows, width, itemsize, sublane)
    grid = (pl.cdiv(rows, tb), pl.cdiv(width, tc))

    tile_bytes = tb * tc * itemsize
    vmem_limit = int(min(_VMEM_LIMIT_CAP,
                         max(_VMEM_LIMIT_FLOOR, 4 * tile_bytes + 2 * 1024 * 1024)))

    # Precompute 1/T once (one scalar op outside the kernel); kernel body is a
    # single multiply per vreg.
    inv_t = (1.0 / temperature.astype(jnp.float32)).reshape(1, 1)

    out2d = pl.pallas_call(
        _temp_scale_kernel,
        out_shape=jax.ShapeDtypeStruct((rows, width), orig_dtype),
        grid=grid,
        in_specs=[
            pl.BlockSpec(memory_space=pltpu.SMEM),           # 1/temperature scalar
            pl.BlockSpec((tb, tc), lambda i, j: (i, j)),     # logits tile
        ],
        out_specs=pl.BlockSpec((tb, tc), lambda i, j: (i, j)),
        compiler_params=pltpu.CompilerParams(
            dimension_semantics=("parallel", "parallel"),
            vmem_limit_bytes=vmem_limit,
        ),
    )(inv_t, x2d)

    return out2d.reshape(orig_shape)


if __name__ == "__main__":
    key = jax.random.PRNGKey(0)

    # Deterministic parameter init, exactly as the module's __init__:
    # temperature = ones(1) * 1.5
    temperature = jnp.ones((1,), dtype=jnp.float32) * 1.5

    k1, k2, k3, k4 = jax.random.split(key, 4)

    # 1) Lane-aligned 2-D logits (batch=16, classes=128), f32.
    logits = jax.random.normal(k1, (16, 128), dtype=jnp.float32)
    out = jax.block_until_ready(temperature_scaling(logits, temperature))
    ref = logits / temperature
    assert jnp.allclose(out, ref, atol=1e-6, rtol=1e-5), "f32 aligned mismatch"

    # 2) Small NON-128-aligned classifier head (4, 10) — full-extent trailing block.
    logits_small = jax.random.normal(k2, (4, 10), dtype=jnp.float32)
    out_small = jax.block_until_ready(temperature_scaling(logits_small, temperature))
    ref_small = logits_small / temperature
    assert jnp.allclose(out_small, ref_small, atol=1e-6, rtol=1e-5), "f32 unaligned mismatch"

    # 3) N-D logits (2, 4, 16, 16), f32 — reshaped to (-1, 16), no pad/slice round-trip.
    logits_nd = jax.random.normal(k3, (2, 4, 16, 16), dtype=jnp.float32)
    out_nd = jax.block_until_ready(temperature_scaling(logits_nd, temperature))
    ref_nd = logits_nd / temperature
    assert out_nd.shape == logits_nd.shape
    assert jnp.allclose(out_nd, ref_nd, atol=1e-6, rtol=1e-5), "f32 N-D mismatch"

    # 4) bf16 logits (compute in f32, cast back to bf16).
    logits_bf16 = jax.random.normal(k4, (16, 128), dtype=jnp.bfloat16)
    out_bf16 = jax.block_until_ready(temperature_scaling(logits_bf16, temperature))
    ref_bf16 = (logits_bf16.astype(jnp.float32) / temperature).astype(jnp.bfloat16)
    assert jnp.allclose(out_bf16.astype(jnp.float32), ref_bf16.astype(jnp.float32),
                        atol=2e-2, rtol=2e-2), "bf16 mismatch"

    print("KERNEL_OK")
</pallas_src>

<mosaic_0001>
module attributes {stable_mosaic.version = 11 : i64} {
  func.func @_temp_scale_kernel(%arg0: i32, %arg1: i32, %arg2: memref<1x1xf32, #tpu.memory_space<smem>>, %arg3: memref<8x128xf32, #tpu.memory_space<vmem>>, %arg4: memref<8x128xf32, #tpu.memory_space<vmem>>) attributes {dimension_semantics = [#tpu.dimension_semantics<parallel>, #tpu.dimension_semantics<parallel>], iteration_bounds = array<i64: 2, 1>, scalar_prefetch = 0 : i64, scratch_operands = 0 : i64, tpu.core_type = #tpu.core_type<tc>, window_params = [{transform_indices = @transform_0, window_bounds = array<i64: 1, 1>}, {transform_indices = @transform_1, window_bounds = array<i64: 8, 128>}, {transform_indices = @transform_2, window_bounds = array<i64: 8, 128>}]} {
    %c0 = arith.constant 0 : index
    %c0_0 = arith.constant 0 : index
    %0 = memref.load %arg2[%c0, %c0_0] : memref<1x1xf32, #tpu.memory_space<smem>>
    %c0_1 = arith.constant 0 : index
    %c0_2 = arith.constant 0 : index
    %1 = vector.load %arg3[%c0_1, %c0_2] : memref<8x128xf32, #tpu.memory_space<vmem>>, vector<8x128xf32>
    %2 = vector.broadcast %0 : f32 to vector<8x128xf32>
    %3 = arith.mulf %1, %2 : vector<8x128xf32>
    %c0_3 = arith.constant 0 : index
    %c0_4 = arith.constant 0 : index
    %4 = vector.load %arg4[%c0_3, %c0_4] : memref<8x128xf32, #tpu.memory_space<vmem>>, vector<8x128xf32>
    tpu.vector_store %arg4[%c0_3, %c0_4], %3 {strides = array<i32>} : memref<8x128xf32, #tpu.memory_space<vmem>>, vector<8x128xf32>,
    return
  }
  func.func @transform_0(%arg0: i32, %arg1: i32) -> (i32, i32) {
    %c0_i32 = arith.constant 0 : i32
    %c0_i32_0 = arith.constant 0 : i32
    %c0_i32_1 = arith.constant 0 : i32
    return %c0_i32, %c0_i32_0 : i32, i32
  }
  func.func @transform_1(%arg0: i32, %arg1: i32) -> (i32, i32) {
    %c0_i32 = arith.constant 0 : i32
    return %arg0, %arg1 : i32, i32
  }
  func.func @transform_2(%arg0: i32, %arg1: i32) -> (i32, i32) {
    %c0_i32 = arith.constant 0 : i32
    return %arg0, %arg1 : i32, i32
  }
}

</mosaic_0001>

<bundles_post_ra>
// kernel: tpu_custom_call.1
= control target key start
LH: loop header
LB: loop body
LE: loop exit
PB: predicated region body
PF: predicated region fallthrough
CT: control target
= control target key end

     0   :  { %s658_s0 = inlined_call_operand.<no memory space> [shape: f32[1,1], index: 0, kind: input, shape index: {}]   ;;  %s659_s1 = inlined_call_operand.hbm [shape: f32[16,128], index: 1, kind: input, shape index: {}]   ;;  %s660_s2 = inlined_call_operand.hbm [shape: f32[16,128], index: 2, kind: output, shape index: {}]  }
   0x1   :  { %7 = sst [smem:[#allocation2]] %s658_s0 }
   0x2   :  { %8 = vsyncpa [#allocation4], 0 }
   0x3   :  { %10 = vsyncpa [#allocation4 + $0x1], 0 }
   0x4   :  { %11 = vsyncpa [#allocation5], 0 }
   0x5   :  { %13 = vsyncpa [#allocation5 + $0x1], 0  ;;  %s486_s11 = smov 0   ;;  %s488_s12 = smov 0  }
   0x6   :  { %s490_s13 = smov 0   ;;  %s492_s14 = smov 0  }
   0x7   :  { %s494_s15 = smov 0   ;;  %s496_s16 = smov 0  }
   0x8 LB: > { %s277_s0 = sadd.s32 4294967295, %s464_s16   ;;  %s278_s17 = sadd.s32 4294967294, %s464_s16   ;;  %s464_s16 = sphi %s496_s16, %s19_s16   ;;  %s460_s15 = sphi %s494_s15, %s676_s15   ;;  %s456_s14 = sphi %s492_s14, %s675_s14   ;;  %s452_s13 = sphi %s490_s13, %s674_s13   ;;  %s448_s12 = sphi %s488_s12, %s673_s12   ;;  %s444_s11 = sphi %s486_s11, %s672_s11  }
   0x9   : > { %s31_s18 = sadd.s32 1, %s460_s15  ;;  %s61_s19 = sadd.s32 1, %s452_s13 }
   0xa   : > { %p33_p0 = scmp.ge.s32.totalorder %s31_s18, 2  ;;  %p68_p1 = scmp.ne.s32.totalorder %s452_s13, %s448_s12 }
   0xb   : > { %p69_p2 = scmp.eq.s32.totalorder %s464_s16, 0  ;;  %p74_p3 = scmp.ne.s32.totalorder %s448_s12, %s444_s11 }
   0xc   : > { %s678_s18 = smov (%p33_p0, %s31_s18), 0  ;;  %p75_p5 = scmp.eq.s32.totalorder %s277_s0, 0 }
   0xd   : > { %p527_p4 = por %p69_p2, %p68_p1  ;;  %s56_s21 = ssub.s32 %s460_s15, %s678_s18 }
   0xe   : > { %p100_p6 = scmp.eq.s32.totalorder %s277_s0, 1  ;;  %p59_p7 = scmp.eq.s32.totalorder %s56_s21, 0 }
   0xf   : > { %p533_p8 = por %p75_p5, %p74_p3  ;;  %p106_p10 = scmp.eq.s32.totalorder %s278_s17, 1 }
  0x10   : > { %p537_p9 = por %p100_p6, %p68_p1  ;;  %p302_p13 = scmp.lt.s32.totalorder %s464_s16, 2 }
  0x11   : > { %s542_s24 = scalar_select %p59_p7, %s452_s13, %s61_s19  }
  0x12   : > { %s664_s23 = scalar_select %p537_p9, 1, 0 }
  0x13   : > { %p544_p11 = por %p106_p10, %p74_p3  ;;  %s129_s26 = sand.u32 1, %s452_s13  }
  0x14   : > { %s281_s27 = sshll.u32 %s129_s26, 3  ;;  %s282_s28 = sshll.u32 %s460_s15, 7 }
  0x15   : > { %s665_s25 = scalar_select %p544_p11, 1, 0 }
  0x16   : > { %s555_s3 = scalar_lea.hbm %s659_s1, %s282_s28  ;;  %s133_s4 = scalar_lea.vmem [#allocation3], %s281_s27 }
  0x17   : > { %s141_s5 = sshll.u32 %s133_s4, 4  ;;  %p561_p0 = pnand %p302_p13, %p527_p4  ;;  %s557_s5 = int_to_ptr.vmem [resolvable:$true] %s141_s5 }
  0x18   : > { %s130_s7 = scalar_lea.sflag [#allocation4], %s129_s26  ;;  %s352_s8 = scalar_lea.hbm %s555_s3, 128 }
  0x19   : > { %p353_p3 = scmp.ne.s32.totalorder %s555_s3, %s352_s8  ;;  %p354_p5 = pneg %p561_p0 }
  0x1a   : > { %s357_s0 = scalar_lea.hbm %s659_s1, 256  ;;  %p358_p4 = scmp.lt.u32.totalorder %s555_s3, %s659_s1 }
  0x1b   : > { %p355_p6 = pnand %p354_p5, %p353_p3  ;;  %p359_p10 = scmp.lt.u32.totalorder %s357_s0, %s352_s8 }
  0x1c   : > { %p361_p12 = scmp.lt.u32.totalorder %s352_s8, %s555_s3 }
  0x1d   : > { %p356_p7 = pneg %p355_p6  ;;  %p360_p13 = por %p359_p10, %p358_p4 }
  0x1f   : > { %p362_p1 = por %p361_p12, %p360_p13 }
  0x21   : > { %p363_p2 = pnand %p362_p1, %p356_p7 }
  0x23   : > { %366 = shalt.err (!%p363_p2)
}
  0x24   : > { %s367_s20 = scalar_lea.vmem %s557_s5, 128  ;;  %s466_s21 = smov [#allocation3]  }
  0x25   : > { %p368_p3 = scmp.ne.s32.totalorder %s557_s5, %s367_s20  ;;  %s372_s26 = sshll.u32 %s466_s21, 4  ;;  %s373_s26 = int_to_ptr.vmem [resolvable:$false] %s372_s26 }
  0x26   : > { %s374_s27 = scalar_lea.vmem %s373_s26, 256  ;;  %p375_p9 = scmp.lt.s32.totalorder %s557_s5, %s373_s26 }
  0x27   : > { %p370_p6 = pnand %p368_p3, %p354_p5  ;;  %p376_p4 = scmp.lt.s32.totalorder %s374_s27, %s367_s20 }
  0x29   : > { %p371_p11 = pneg %p370_p6  ;;  %p377_p10 = por %p376_p4, %p375_p9 }
  0x2b   : > { %p378_p12 = pnand %p377_p10, %p371_p11 }
  0x2d   : > { %381 = shalt.err (!%p378_p12)
}
  0x2e   : > { %297 = dma.hbm_to_vmem [thread:$0]  (!%p561_p0), %s555_s3, 128, %s557_s5, %s130_s7  }
  0x2f   : > { %p667_p1 = scmp.lt.s32.totalorder %s464_s16, 3  ;;  %p668_p2 = scmp.ge.s32.totalorder %s464_s16, 1 }
  0x31   : > { %p147_p5 = pnand %p668_p2, %p667_p1 }
  0x32   : > { %s597_s28 = sand.u32 (!%p147_p5), 1, %s448_s12  }
  0x33   : > { %150 = sbr.rel (%p147_p5) target bundleno = 85 (0x55), region = 28  ;;  %s284_s29 = sshll.u32 (!%p147_p5), %s597_s28, 3 }
  0x34   : > { %s153_s30 = scalar_lea.sflag (!%p147_p5), [#allocation4], %s597_s28  ;;  %s156_s4 = scalar_lea.vmem (!%p147_p5), [#allocation3], %s284_s29 }
  0x3a   : > { %435 = dma.done.wait (%p533_p8), %s153_s30, 128  }
  0x3b   : > { %437 = vsyncadd (%p533_p8), %s153_s30, 4294967168  ;;  %s177_s3 = sld [smem:[#allocation2]]  ;;  %s176_s5 = scalar_lea.vmem [#allocation6], %s284_s29  ;;  %v178_v0 = vld [vmem:[%s156_s4] sm:$0xff] }
  0x3c   : > { %s197_s6 = sshll.u32 %s176_s5, 4  ;;  %s287_s7 = sshll.u32 %s456_s14, 7  ;;  %s606_s6 = int_to_ptr.vmem [resolvable:$true] %s197_s6 }
  0x3d   : > { %s611_s22 = scalar_lea.hbm %s660_s2, %s287_s7  ;;  %s183_s10 = scalar_lea.sflag [#allocation5], %s597_s28 }
  0x3e   : > { %s382_s0 = scalar_lea.vmem %s606_s6, 128  ;;  %p669_p9 = scmp.ne.s32.totalorder %s664_s23, 0 }
  0x3f   : > { %p383_p8 = scmp.ne.s32.totalorder %s606_s6, %s382_s0  ;;  %s467_s14 = smov [#allocation6]  }
  0x40   : > { %s386_s17 = sshll.u32 %s467_s14, 4  ;;  %s387_s17 = int_to_ptr.vmem [resolvable:$false] %s386_s17 }
  0x41   : > { %v179_v1 = vstv %s177_s3  ;;  %p384_p11 = pnand %p383_p8, %p669_p9  ;;  %s388_s19 = scalar_lea.vmem %s387_s17, 256 }
  0x42   : > { %v180_v2 = vmul.f32 %v179_v1, %v178_v0  ;;  %p389_p7 = scmp.lt.s32.totalorder %s606_s6, %s387_s17  ;;  %p390_p13 = scmp.lt.s32.totalorder %s388_s19, %s382_s0 }
  0x43   : > { %p385_p0 = pneg %p384_p11 }
  0x44   : > { %181 = vst [vmem:[%s176_s5] sm:$0xff] %v180_v2  ;;  %p391_p3 = por %p390_p13, %p389_p7 }
  0x46   : > { %p392_p6 = pnand %p391_p3, %p385_p0 }
  0x48   : > { %395 = shalt.err (!%p392_p6)
}
  0x49   : > { %s396_s20 = scalar_lea.hbm %s611_s22, 128  ;;  %s400_s27 = scalar_lea.hbm %s660_s2, 256 }
  0x4a   : > { %p397_p4 = scmp.ne.s32.totalorder %s611_s22, %s396_s20  ;;  %p401_p1 = scmp.lt.u32.totalorder %s611_s22, %s660_s2 }
  0x4b   : > { %p402_p2 = scmp.lt.u32.totalorder %s400_s27, %s396_s20  ;;  %p404_p8 = scmp.lt.u32.totalorder %s396_s20, %s611_s22 }
  0x4c   : > { %p398_p10 = pnand %p397_p4, %p669_p9 }
  0x4d   : > { %p403_p5 = por %p402_p2, %p401_p1 }
  0x4e   : > { %p399_p12 = pneg %p398_p10 }
  0x4f   : > { %p405_p11 = por %p404_p8, %p403_p5 }
  0x51   : > { %p406_p0 = pnand %p405_p11, %p399_p12 }
  0x53   : > { %409 = shalt.err (!%p406_p0)
}
  0x54   : > { %292 = dma.vmem_to_hbm [thread:$0]  (%p669_p9), %s606_s6, 128, %s611_s22, %s183_s10  }
  0x55 PF: > { %s209_s30 = sand.u32 1, %s444_s11   ;;  %p670_p7 = scmp.ne.s32.totalorder %s665_s25, 0 }
  0x56   : > { %p671_p13 = scmp.ge.s32.totalorder %s464_s16, 2  ;;  %s210_s4 = scalar_lea.sflag [#allocation5], %s209_s30 }
  0x58   : > { %p299_p3 = pnand %p671_p13, %p670_p7 }
  0x5a   : > { %439 = dma.done.wait (!%p299_p3), %s210_s4, 128  }
  0x5b   : > { %441 = vsyncadd (!%p299_p3), %s210_s4, 4294967168  ;;  %s19_s16 = sadd.s32 1, %s464_s16   ;;  %s672_s11 = smov %s448_s12 }
  0x5c   : > { %p16_p6 = scmp.ge.s32.totalorder %s19_s16, 4   ;;  %s673_s12 = smov %s452_s13 }
  0x5d   : > { %s674_s13 = smov %s542_s24  ;;  %s675_s14 = smov %s460_s15 }
  0x5e   : > { %s676_s15 = smov %s678_s18  ;;  %18 = sbr.rel (!%p16_p6) target bundleno = 8 (0x8), region = 73 }
  0x65   :  { %215 = vsyncpa [#allocation4], 1 }
  0x66   :  { %217 = vsyncpa [#allocation4 + $0x1], 1 }
  0x67   :  { %218 = vsyncpa [#allocation5], 1 }
  0x68   :  { %220 = vsyncpa [#allocation5 + $0x1], 1 }

</bundles_post_ra>
